<compile_context>
chip_gen: v5e
topology: v5e:2x2
jax: 0.10.0
libtpu: 0.0.40
codegen_flags: <defaults>
</compile_context>

<pallas_src>
import functools
import math

import jax
import jax.numpy as jnp
from jax import lax
from jax.experimental import pallas as pl
from jax.experimental.pallas import tpu as pltpu


# ----------------------------------------------------------------------------
# In-kernel helpers (all f32)
# ----------------------------------------------------------------------------
def _gelu_tanh(x):
    c = math.sqrt(2.0 / math.pi)
    return 0.5 * x * (1.0 + jnp.tanh(c * (x + 0.044715 * x * x * x)))


def _layer_norm(x, gamma, beta, eps):
    mu = jnp.mean(x, axis=-1, keepdims=True)
    var = jnp.mean(jnp.square(x - mu), axis=-1, keepdims=True)
    return (x - mu) * lax.rsqrt(var + eps) * gamma + beta


def _default_vmem_limit_bytes():
    """3/4 of physical VMEM: ~48 MiB on v7x (64 MiB), ~96 MiB on v5e/v6e (128 MiB)."""
    try:
        info = pltpu.get_tpu_info()
        cap = getattr(info, "vmem_capacity_bytes", None)
        if cap:
            return int(cap) * 3 // 4
    except Exception:
        pass
    return 48 * 1024 * 1024  # safe on every generation


# ----------------------------------------------------------------------------
# One fused RobertaLayer kernel (runs for one batch row per grid step)
# ----------------------------------------------------------------------------
def roberta_layer_kernel(
    x_ref,        # (1, S, H)  f32 hidden states for this batch row
    mask_ref,     # (1, 1, S)  f32 additive attention mask (0 keep, -1e9 drop)
    wqkv_ref, bqkv_ref,    # (H, 3H) bf16, (1, 3H) f32   fused q|k|v dense
    wo_ref, bo_ref,        # (H, H)  bf16, (1, H)  f32   attention output dense
    g1_ref, be1_ref,       # (1, H)  f32                 attention LayerNorm
    wi_ref, bi_ref,        # (H, I)  bf16, (1, I)  f32   intermediate dense
    wo2_ref, bo2_ref,      # (I, H)  bf16, (1, H)  f32   output dense
    g2_ref, be2_ref,       # (1, H)  f32                 output LayerNorm
    out_ref,               # (1, S, H) f32
    ctx_ref,               # scratch (S, H) f32: per-head context slab
    *, num_heads, head_size, eps,
):
    bf16 = jnp.bfloat16
    H = num_heads * head_size

    x = x_ref[0]                      # (S, H) f32
    mask = mask_ref[0]                # (1, S), broadcasts over query rows

    # ---- fused q/k/v projection: one bf16 MXU matmul, f32 accumulate -------
    qkv = jnp.dot(x.astype(bf16), wqkv_ref[...],
                  preferred_element_type=jnp.float32) + bqkv_ref[...]   # (S, 3H)

    # Fold the 1/sqrt(d) scale into q once (f32), then cast operands to bf16.
    scale = 1.0 / math.sqrt(head_size)
    q = (qkv[:, 0 * H:1 * H] * scale).astype(bf16)
    k = qkv[:, 1 * H:2 * H].astype(bf16)
    v = qkv[:, 2 * H:3 * H].astype(bf16)

    # ---- multi-head attention, static head loop ----------------------------
    # Each head writes its (S, d) context into ctx_ref at its column range;
    # the output projection is ONE full-depth (K = H) matmul afterwards.
    for h in range(num_heads):
        lo = h * head_size
        qh = q[:, lo:lo + head_size]                      # (S, d) bf16
        kh = k[:, lo:lo + head_size]                      # (S, d) bf16
        vh = v[:, lo:lo + head_size]                      # (S, d) bf16

        # scores = qh @ kh^T (contract on head dim, no explicit transpose)
        scores = lax.dot_general(qh, kh, (((1,), (1,)), ((), ())),
                                 preferred_element_type=jnp.float32)    # (S, S) f32
        scores = scores + mask

        m = jnp.max(scores, axis=-1, keepdims=True)
        e = jnp.exp(scores - m)                               # f32 (S, S)
        denom = jnp.sum(e, axis=-1, keepdims=True)            # f32 (S, 1)

        # Unnormalized context, then deferred normalization on the small tile.
        ctx_h = jnp.dot(e.astype(bf16), vh,
                        preferred_element_type=jnp.float32)   # (S, d) f32
        ctx_ref[:, lo:lo + head_size] = ctx_h * pl.reciprocal(denom, approx=True)

    # ---- attention output projection (single K = H matmul) + bias ----------
    attn = jnp.dot(ctx_ref[...].astype(bf16), wo_ref[...],
                   preferred_element_type=jnp.float32) + bo_ref[...]

    # ---- residual + LayerNorm (f32) -----------------------------------------
    h1 = _layer_norm(attn + x, g1_ref[...], be1_ref[...], eps)

    # ---- feed-forward --------------------------------------------------------
    inter = jnp.dot(h1.astype(bf16), wi_ref[...],
                    preferred_element_type=jnp.float32) + bi_ref[...]
    inter = _gelu_tanh(inter)
    ffn = jnp.dot(inter.astype(bf16), wo2_ref[...],
                  preferred_element_type=jnp.float32) + bo2_ref[...]

    out_ref[0] = _layer_norm(ffn + h1, g2_ref[...], be2_ref[...], eps)


# ----------------------------------------------------------------------------
# Wrappers
# ----------------------------------------------------------------------------
def roberta_layer(x, mask, p, *, num_heads, eps, vmem_limit_bytes=None):
    """Apply one fused RobertaLayer.  x: (B, S, H) f32, mask: (B, 1, S) additive."""
    B, S, H = x.shape
    I = p["wi"].shape[1]
    head_size = H // num_heads
    bf16 = jnp.bfloat16

    if vmem_limit_bytes is None:
        vmem_limit_bytes = _default_vmem_limit_bytes()

    # Weights stored/loaded as bf16 (halves VMEM residency + HBM DMA);
    # biases and LayerNorm params stay f32 (added to f32 accumulators).
    wqkv = jnp.concatenate([p["wq"], p["wk"], p["wv"]], axis=1).astype(bf16)
    bqkv = jnp.concatenate([p["bq"], p["bk"], p["bv"]], axis=1)
    weights = (wqkv, bqkv,
               p["wo"].astype(bf16), p["bo"],
               p["g1"], p["be1"],
               p["wi"].astype(bf16), p["bi"],
               p["wo2"].astype(bf16), p["bo2"],
               p["g2"], p["be2"])

    kernel = functools.partial(roberta_layer_kernel, num_heads=num_heads,
                               head_size=head_size, eps=eps)

    batch_map = lambda b: (b, 0, 0)

    in_specs = [pl.BlockSpec((1, S, H), batch_map),       # activations: tiled over batch
                pl.BlockSpec((1, 1, S), batch_map)]       # mask: tiled over batch
    # Weights: whole-array, single-buffered, VMEM-resident (no per-step re-DMA,
    # no double-buffer footprint -- important on v7x's 64 MiB VMEM).
    in_specs += [pl.BlockSpec(memory_space=pltpu.MemorySpace.VMEM)
                 for _ in weights]

    # Advisory cost estimate so XLA schedules the surrounding graph around us.
    flops = (2 * B * S * H * 3 * H          # fused qkv projection
             + 2 * B * S * S * H * 2        # scores + e @ v (all heads)
             + 2 * B * S * H * H            # attention output projection
             + 2 * B * S * H * I * 2)       # FFN
    transcendentals = B * (num_heads * S * S + S * I)
    weight_bytes = sum(int(w.size) * jnp.dtype(w.dtype).itemsize for w in weights)
    bytes_accessed = 4 * (2 * B * S * H + B * S) + weight_bytes

    grid_spec = pltpu.PrefetchScalarGridSpec(
        num_scalar_prefetch=0,
        grid=(B,),
        in_specs=in_specs,
        out_specs=pl.BlockSpec((1, S, H), batch_map),
        scratch_shapes=[pltpu.VMEM((S, H), jnp.float32)],   # per-head context slab
    )

    return pl.pallas_call(
        kernel,
        out_shape=jax.ShapeDtypeStruct((B, S, H), jnp.float32),
        grid_spec=grid_spec,
        compiler_params=pltpu.CompilerParams(
            dimension_semantics=("parallel",),        # shard batch over TCs (v7x)
            vmem_limit_bytes=vmem_limit_bytes),
        cost_estimate=pl.CostEstimate(flops=flops,
                                      transcendentals=transcendentals,
                                      bytes_accessed=bytes_accessed),
    )(x, mask, *weights)


def roberta_encoder(hidden_states, attention_mask, layer_params, *, num_heads, eps):
    """RobertaEncoder.forward (return_dict=False -> last_hidden_state)."""
    h = hidden_states
    for p in layer_params:                    # layers are inherently sequential
        h = roberta_layer(h, attention_mask, p, num_heads=num_heads, eps=eps)
    return h


# ----------------------------------------------------------------------------
# Parameter init (PyTorch Linear/LayerNorm-shaped, weights pre-transposed)
# ----------------------------------------------------------------------------
def init_layer_params(key, hidden_size, intermediate_size):
    ks = jax.random.split(key, 16)

    def lin(kw, kb, fan_in, fan_out):
        bound = 1.0 / math.sqrt(fan_in)
        # PyTorch stores (out, in); we pre-transpose to (in, out) for row-major matmul.
        w = jax.random.uniform(kw, (fan_in, fan_out), jnp.float32, -bound, bound)
        b = jax.random.uniform(kb, (1, fan_out), jnp.float32, -bound, bound)
        return w, b

    wq, bq = lin(ks[0], ks[1], hidden_size, hidden_size)
    wk, bk = lin(ks[2], ks[3], hidden_size, hidden_size)
    wv, bv = lin(ks[4], ks[5], hidden_size, hidden_size)
    wo, bo = lin(ks[6], ks[7], hidden_size, hidden_size)
    wi, bi = lin(ks[8], ks[9], hidden_size, intermediate_size)
    wo2, bo2 = lin(ks[10], ks[11], intermediate_size, hidden_size)
    # LayerNorm params (perturbed from ones/zeros so the test is meaningful).
    g1 = 1.0 + 0.1 * jax.random.normal(ks[12], (1, hidden_size), jnp.float32)
    be1 = 0.1 * jax.random.normal(ks[13], (1, hidden_size), jnp.float32)
    g2 = 1.0 + 0.1 * jax.random.normal(ks[14], (1, hidden_size), jnp.float32)
    be2 = 0.1 * jax.random.normal(ks[15], (1, hidden_size), jnp.float32)
    return {"wq": wq, "bq": bq, "wk": wk, "bk": bk, "wv": wv, "bv": bv,
            "wo": wo, "bo": bo, "g1": g1, "be1": be1,
            "wi": wi, "bi": bi, "wo2": wo2, "bo2": bo2, "g2": g2, "be2": be2}


# ----------------------------------------------------------------------------
# Pure-JAX reference (same mixed-precision policy: bf16 matmul operands,
# f32 accumulation, f32 elementwise; exact softmax division)
# ----------------------------------------------------------------------------
def _ref_layer_norm(x, gamma, beta, eps):
    mu = jnp.mean(x, axis=-1, keepdims=True)
    var = jnp.mean(jnp.square(x - mu), axis=-1, keepdims=True)
    return (x - mu) / jnp.sqrt(var + eps) * gamma + beta


def reference_layer(x, mask, p, *, num_heads, eps):
    B, S, H = x.shape
    hd = H // num_heads
    bf = jnp.bfloat16
    f32 = jnp.float32

    def dense(a, w, b):
        return jnp.einsum("...k,kn->...n", a.astype(bf), w.astype(bf),
                          preferred_element_type=f32) + b

    q = dense(x, p["wq"], p["bq"])
    k = dense(x, p["wk"], p["bk"])
    v = dense(x, p["wv"], p["bv"])

    def split(t):
        return t.reshape(B, S, num_heads, hd).transpose(0, 2, 1, 3)

    qh, kh, vh = split(q), split(k), split(v)
    scores = jnp.einsum("bhqd,bhkd->bhqk",
                        (qh / math.sqrt(hd)).astype(bf), kh.astype(bf),
                        preferred_element_type=f32)
    scores = scores + mask[:, None, :, :]          # (B,1,1,S) additive
    probs = jax.nn.softmax(scores, axis=-1)
    ctx = jnp.einsum("bhqk,bhkd->bhqd", probs.astype(bf), vh.astype(bf),
                     preferred_element_type=f32)
    ctx = ctx.transpose(0, 2, 1, 3).reshape(B, S, H)
    attn = dense(ctx, p["wo"], p["bo"])
    h1 = _ref_layer_norm(attn + x, p["g1"], p["be1"], eps)
    inter = jax.nn.gelu(dense(h1, p["wi"], p["bi"]), approximate=True)
    ffn = dense(inter, p["wo2"], p["bo2"])
    return _ref_layer_norm(ffn + h1, p["g2"], p["be2"], eps)


def reference_encoder(x, mask, layer_params, *, num_heads, eps):
    h = x
    for p in layer_params:
        h = reference_layer(h, mask, p, num_heads=num_heads, eps=eps)
    return h


# ----------------------------------------------------------------------------
if __name__ == "__main__":
    key = jax.random.PRNGKey(0)
    B, S, H = 2, 8, 32
    NUM_HEADS = 4
    INTERMEDIATE = 64
    NUM_LAYERS = 2
    EPS = 1e-5

    k_x, k_p = jax.random.split(key)
    hidden_states = jax.random.normal(k_x, (B, S, H), jnp.float32)

    # Additive attention mask: batch row 1 masks out its last two tokens.
    keep = jnp.ones((B, 1, S), jnp.float32)
    keep = keep.at[1, 0, S - 2:].set(0.0)
    attention_mask = (1.0 - keep) * (-1e9)

    layer_keys = jax.random.split(k_p, NUM_LAYERS)
    layer_params = [init_layer_params(lk, H, INTERMEDIATE) for lk in layer_keys]

    out = roberta_encoder(hidden_states, attention_mask, layer_params,
                          num_heads=NUM_HEADS, eps=EPS)
    out = jax.block_until_ready(out)

    ref = reference_encoder(hidden_states, attention_mask, layer_params,
                            num_heads=NUM_HEADS, eps=EPS)

    assert out.shape == (B, S, H)
    max_err = float(jnp.max(jnp.abs(out - ref)))
    # Tolerance covers the EUP approx reciprocal and bf16 rounding-order
    # differences (normalize-before vs. after the probs @ v matmul).
    assert jnp.allclose(out, ref, atol=1e-2, rtol=1e-2), max_err

    print("KERNEL_OK")
</pallas_src>

<mosaic_0001>
module attributes {stable_mosaic.version = 11 : i64} {
  func.func @roberta_layer_kernel(%arg0: i32, %arg1: memref<1x8x32xf32, #tpu.memory_space<vmem>>, %arg2: memref<1x1x8xf32, #tpu.memory_space<vmem>>, %arg3: memref<32x96xbf16, #tpu.memory_space<vmem>>, %arg4: memref<1x96xf32, #tpu.memory_space<vmem>>, %arg5: memref<32x32xbf16, #tpu.memory_space<vmem>>, %arg6: memref<1x32xf32, #tpu.memory_space<vmem>>, %arg7: memref<1x32xf32, #tpu.memory_space<vmem>>, %arg8: memref<1x32xf32, #tpu.memory_space<vmem>>, %arg9: memref<32x64xbf16, #tpu.memory_space<vmem>>, %arg10: memref<1x64xf32, #tpu.memory_space<vmem>>, %arg11: memref<64x32xbf16, #tpu.memory_space<vmem>>, %arg12: memref<1x32xf32, #tpu.memory_space<vmem>>, %arg13: memref<1x32xf32, #tpu.memory_space<vmem>>, %arg14: memref<1x32xf32, #tpu.memory_space<vmem>>, %arg15: memref<1x8x32xf32, #tpu.memory_space<vmem>>, %arg16: memref<8x32xf32, #tpu.memory_space<vmem>>) attributes {dimension_semantics = [#tpu.dimension_semantics<parallel>], iteration_bounds = array<i64: 2>, scalar_prefetch = 0 : i64, scratch_operands = 1 : i64, tpu.core_type = #tpu.core_type<tc>, window_params = [{transform_indices = @transform_0, window_bounds = array<i64: 1, 8, 32>}, {transform_indices = @transform_1, window_bounds = array<i64: 1, 1, 8>}, {pipeline_mode = #tpu.pipeline_mode<synchronous>, transform_indices = @transform_2, window_bounds = array<i64: 32, 96>}, {pipeline_mode = #tpu.pipeline_mode<synchronous>, transform_indices = @transform_3, window_bounds = array<i64: 1, 96>}, {pipeline_mode = #tpu.pipeline_mode<synchronous>, transform_indices = @transform_4, window_bounds = array<i64: 32, 32>}, {pipeline_mode = #tpu.pipeline_mode<synchronous>, transform_indices = @transform_5, window_bounds = array<i64: 1, 32>}, {pipeline_mode = #tpu.pipeline_mode<synchronous>, transform_indices = @transform_6, window_bounds = array<i64: 1, 32>}, {pipeline_mode = #tpu.pipeline_mode<synchronous>, transform_indices = @transform_7, window_bounds = array<i64: 1, 32>}, {pipeline_mode = #tpu.pipeline_mode<synchronous>, transform_indices = @transform_8, window_bounds = array<i64: 32, 64>}, {pipeline_mode = #tpu.pipeline_mode<synchronous>, transform_indices = @transform_9, window_bounds = array<i64: 1, 64>}, {pipeline_mode = #tpu.pipeline_mode<synchronous>, transform_indices = @transform_10, window_bounds = array<i64: 64, 32>}, {pipeline_mode = #tpu.pipeline_mode<synchronous>, transform_indices = @transform_11, window_bounds = array<i64: 1, 32>}, {pipeline_mode = #tpu.pipeline_mode<synchronous>, transform_indices = @transform_12, window_bounds = array<i64: 1, 32>}, {pipeline_mode = #tpu.pipeline_mode<synchronous>, transform_indices = @transform_13, window_bounds = array<i64: 1, 32>}, {transform_indices = @transform_14, window_bounds = array<i64: 1, 8, 32>}]} {
    %c0 = arith.constant 0 : index
    %c0_0 = arith.constant 0 : index
    %c0_1 = arith.constant 0 : index
    %0 = vector.load %arg1[%c0, %c0_0, %c0_1] : memref<1x8x32xf32, #tpu.memory_space<vmem>>, vector<1x8x32xf32>
    %1 = vector.shape_cast %0 : vector<1x8x32xf32> to vector<8x32xf32>
    %c0_2 = arith.constant 0 : index
    %c0_3 = arith.constant 0 : index
    %c0_4 = arith.constant 0 : index
    %2 = vector.load %arg2[%c0_2, %c0_3, %c0_4] : memref<1x1x8xf32, #tpu.memory_space<vmem>>, vector<1x1x8xf32>
    %3 = vector.shape_cast %2 : vector<1x1x8xf32> to vector<1x8xf32>
    %4 = arith.truncf %1 : vector<8x32xf32> to vector<8x32xbf16>
    %c0_5 = arith.constant 0 : index
    %c0_6 = arith.constant 0 : index
    %5 = vector.load %arg3[%c0_5, %c0_6] : memref<32x96xbf16, #tpu.memory_space<vmem>>, vector<32x96xbf16>
    %cst = arith.constant dense<0.000000e+00> : vector<8x96xf32>
    %6 = tpu.matmul %4, %5, %cst {dimension_numbers = #tpu.dot_dimension_numbers<[1], [0], [0], [1], [0, 0, 1, 1], [], []>} : vector<8x32xbf16>, vector<32x96xbf16>, vector<8x96xf32> -> vector<8x96xf32>
    %c0_7 = arith.constant 0 : index
    %c0_8 = arith.constant 0 : index
    %7 = vector.load %arg4[%c0_7, %c0_8] : memref<1x96xf32, #tpu.memory_space<vmem>>, vector<1x96xf32>
    %8 = vector.broadcast %7 : vector<1x96xf32> to vector<8x96xf32>
    %9 = arith.addf %6, %8 : vector<8x96xf32>
    %10 = vector.extract_strided_slice %9 {offsets = [0, 0], sizes = [8, 32], strides = [1, 1]} : vector<8x96xf32> to vector<8x32xf32>
    %cst_9 = arith.constant 0.353553385 : f32
    %11 = vector.broadcast %cst_9 : f32 to vector<8x32xf32>
    %12 = arith.mulf %10, %11 : vector<8x32xf32>
    %13 = arith.truncf %12 : vector<8x32xf32> to vector<8x32xbf16>
    %14 = vector.extract_strided_slice %9 {offsets = [0, 32], sizes = [8, 32], strides = [1, 1]} : vector<8x96xf32> to vector<8x32xf32>
    %15 = arith.truncf %14 : vector<8x32xf32> to vector<8x32xbf16>
    %16 = vector.extract_strided_slice %9 {offsets = [0, 64], sizes = [8, 32], strides = [1, 1]} : vector<8x96xf32> to vector<8x32xf32>
    %17 = arith.truncf %16 : vector<8x32xf32> to vector<8x32xbf16>
    %18 = vector.extract_strided_slice %13 {offsets = [0, 0], sizes = [8, 8], strides = [1, 1]} : vector<8x32xbf16> to vector<8x8xbf16>
    %19 = vector.extract_strided_slice %15 {offsets = [0, 0], sizes = [8, 8], strides = [1, 1]} : vector<8x32xbf16> to vector<8x8xbf16>
    %20 = vector.extract_strided_slice %17 {offsets = [0, 0], sizes = [8, 8], strides = [1, 1]} : vector<8x32xbf16> to vector<8x8xbf16>
    %cst_10 = arith.constant dense<0.000000e+00> : vector<8x8xf32>
    %21 = tpu.matmul %18, %19, %cst_10 {dimension_numbers = #tpu.dot_dimension_numbers<[1], [1], [0], [0], [0, 0, 1, 0], [], []>} : vector<8x8xbf16>, vector<8x8xbf16>, vector<8x8xf32> -> vector<8x8xf32>
    %22 = vector.broadcast %3 : vector<1x8xf32> to vector<8x8xf32>
    %23 = arith.addf %21, %22 : vector<8x8xf32>
    %cst_11 = arith.constant dense<0xFF800000> : vector<8xf32>
    %24 = vector.multi_reduction <maximumf>, %23, %cst_11 [1] : vector<8x8xf32> to vector<8xf32>
    %25 = vector.shape_cast %24 : vector<8xf32> to vector<8x1xf32>
    %26 = vector.broadcast %25 : vector<8x1xf32> to vector<8x8xf32>
    %27 = arith.subf %23, %26 : vector<8x8xf32>
    %28 = math.exp %27 : vector<8x8xf32>
    %cst_12 = arith.constant dense<0.000000e+00> : vector<8xf32>
    %29 = vector.multi_reduction <add>, %28, %cst_12 [1] : vector<8x8xf32> to vector<8xf32>
    %30 = vector.shape_cast %29 : vector<8xf32> to vector<8x1xf32>
    %31 = arith.truncf %28 : vector<8x8xf32> to vector<8x8xbf16>
    %cst_13 = arith.constant dense<0.000000e+00> : vector<8x8xf32>
    %32 = tpu.matmul %31, %20, %cst_13 {dimension_numbers = #tpu.dot_dimension_numbers<[1], [0], [0], [1], [0, 0, 1, 1], [], []>} : vector<8x8xbf16>, vector<8x8xbf16>, vector<8x8xf32> -> vector<8x8xf32>
    %33 = tpu.reciprocal %30 {approx = true} : vector<8x1xf32> -> vector<8x1xf32>
    %34 = vector.broadcast %33 : vector<8x1xf32> to vector<8x8xf32>
    %35 = arith.mulf %32, %34 : vector<8x8xf32>
    %c0_14 = arith.constant 0 : index
    %c0_15 = arith.constant 0 : index
    %36 = vector.load %arg16[%c0_14, %c0_15] : memref<8x32xf32, #tpu.memory_space<vmem>>, vector<8x8xf32>
    tpu.vector_store %arg16[%c0_14, %c0_15], %35 {strides = array<i32>} : memref<8x32xf32, #tpu.memory_space<vmem>>, vector<8x8xf32>,
    %37 = vector.extract_strided_slice %13 {offsets = [0, 8], sizes = [8, 8], strides = [1, 1]} : vector<8x32xbf16> to vector<8x8xbf16>
    %38 = vector.extract_strided_slice %15 {offsets = [0, 8], sizes = [8, 8], strides = [1, 1]} : vector<8x32xbf16> to vector<8x8xbf16>
    %39 = vector.extract_strided_slice %17 {offsets = [0, 8], sizes = [8, 8], strides = [1, 1]} : vector<8x32xbf16> to vector<8x8xbf16>
    %cst_16 = arith.constant dense<0.000000e+00> : vector<8x8xf32>
    %40 = tpu.matmul %37, %38, %cst_16 {dimension_numbers = #tpu.dot_dimension_numbers<[1], [1], [0], [0], [0, 0, 1, 0], [], []>} : vector<8x8xbf16>, vector<8x8xbf16>, vector<8x8xf32> -> vector<8x8xf32>
    %41 = vector.broadcast %3 : vector<1x8xf32> to vector<8x8xf32>
    %42 = arith.addf %40, %41 : vector<8x8xf32>
    %cst_17 = arith.constant dense<0xFF800000> : vector<8xf32>
    %43 = vector.multi_reduction <maximumf>, %42, %cst_17 [1] : vector<8x8xf32> to vector<8xf32>
    %44 = vector.shape_cast %43 : vector<8xf32> to vector<8x1xf32>
    %45 = vector.broadcast %44 : vector<8x1xf32> to vector<8x8xf32>
    %46 = arith.subf %42, %45 : vector<8x8xf32>
    %47 = math.exp %46 : vector<8x8xf32>
    %cst_18 = arith.constant dense<0.000000e+00> : vector<8xf32>
    %48 = vector.multi_reduction <add>, %47, %cst_18 [1] : vector<8x8xf32> to vector<8xf32>
    %49 = vector.shape_cast %48 : vector<8xf32> to vector<8x1xf32>
    %50 = arith.truncf %47 : vector<8x8xf32> to vector<8x8xbf16>
    %cst_19 = arith.constant dense<0.000000e+00> : vector<8x8xf32>
    %51 = tpu.matmul %50, %39, %cst_19 {dimension_numbers = #tpu.dot_dimension_numbers<[1], [0], [0], [1], [0, 0, 1, 1], [], []>} : vector<8x8xbf16>, vector<8x8xbf16>, vector<8x8xf32> -> vector<8x8xf32>
    %52 = tpu.reciprocal %49 {approx = true} : vector<8x1xf32> -> vector<8x1xf32>
    %53 = vector.broadcast %52 : vector<8x1xf32> to vector<8x8xf32>
    %54 = arith.mulf %51, %53 : vector<8x8xf32>
    %c0_20 = arith.constant 0 : index
    %c8 = arith.constant 8 : index
    %55 = vector.load %arg16[%c0_20, %c8] : memref<8x32xf32, #tpu.memory_space<vmem>>, vector<8x8xf32>
    tpu.vector_store %arg16[%c0_20, %c8], %54 {strides = array<i32>} : memref<8x32xf32, #tpu.memory_space<vmem>>, vector<8x8xf32>,
    %56 = vector.extract_strided_slice %13 {offsets = [0, 16], sizes = [8, 8], strides = [1, 1]} : vector<8x32xbf16> to vector<8x8xbf16>
    %57 = vector.extract_strided_slice %15 {offsets = [0, 16], sizes = [8, 8], strides = [1, 1]} : vector<8x32xbf16> to vector<8x8xbf16>
    %58 = vector.extract_strided_slice %17 {offsets = [0, 16], sizes = [8, 8], strides = [1, 1]} : vector<8x32xbf16> to vector<8x8xbf16>
    %cst_21 = arith.constant dense<0.000000e+00> : vector<8x8xf32>
    %59 = tpu.matmul %56, %57, %cst_21 {dimension_numbers = #tpu.dot_dimension_numbers<[1], [1], [0], [0], [0, 0, 1, 0], [], []>} : vector<8x8xbf16>, vector<8x8xbf16>, vector<8x8xf32> -> vector<8x8xf32>
    %60 = vector.broadcast %3 : vector<1x8xf32> to vector<8x8xf32>
    %61 = arith.addf %59, %60 : vector<8x8xf32>
    %cst_22 = arith.constant dense<0xFF800000> : vector<8xf32>
    %62 = vector.multi_reduction <maximumf>, %61, %cst_22 [1] : vector<8x8xf32> to vector<8xf32>
    %63 = vector.shape_cast %62 : vector<8xf32> to vector<8x1xf32>
    %64 = vector.broadcast %63 : vector<8x1xf32> to vector<8x8xf32>
    %65 = arith.subf %61, %64 : vector<8x8xf32>
    %66 = math.exp %65 : vector<8x8xf32>
    %cst_23 = arith.constant dense<0.000000e+00> : vector<8xf32>
    %67 = vector.multi_reduction <add>, %66, %cst_23 [1] : vector<8x8xf32> to vector<8xf32>
    %68 = vector.shape_cast %67 : vector<8xf32> to vector<8x1xf32>
    %69 = arith.truncf %66 : vector<8x8xf32> to vector<8x8xbf16>
    %cst_24 = arith.constant dense<0.000000e+00> : vector<8x8xf32>
    %70 = tpu.matmul %69, %58, %cst_24 {dimension_numbers = #tpu.dot_dimension_numbers<[1], [0], [0], [1], [0, 0, 1, 1], [], []>} : vector<8x8xbf16>, vector<8x8xbf16>, vector<8x8xf32> -> vector<8x8xf32>
    %71 = tpu.reciprocal %68 {approx = true} : vector<8x1xf32> -> vector<8x1xf32>
    %72 = vector.broadcast %71 : vector<8x1xf32> to vector<8x8xf32>
    %73 = arith.mulf %70, %72 : vector<8x8xf32>
    %c0_25 = arith.constant 0 : index
    %c16 = arith.constant 16 : index
    %74 = vector.load %arg16[%c0_25, %c16] : memref<8x32xf32, #tpu.memory_space<vmem>>, vector<8x8xf32>
    tpu.vector_store %arg16[%c0_25, %c16], %73 {strides = array<i32>} : memref<8x32xf32, #tpu.memory_space<vmem>>, vector<8x8xf32>,
    %75 = vector.extract_strided_slice %13 {offsets = [0, 24], sizes = [8, 8], strides = [1, 1]} : vector<8x32xbf16> to vector<8x8xbf16>
    %76 = vector.extract_strided_slice %15 {offsets = [0, 24], sizes = [8, 8], strides = [1, 1]} : vector<8x32xbf16> to vector<8x8xbf16>
    %77 = vector.extract_strided_slice %17 {offsets = [0, 24], sizes = [8, 8], strides = [1, 1]} : vector<8x32xbf16> to vector<8x8xbf16>
    %cst_26 = arith.constant dense<0.000000e+00> : vector<8x8xf32>
    %78 = tpu.matmul %75, %76, %cst_26 {dimension_numbers = #tpu.dot_dimension_numbers<[1], [1], [0], [0], [0, 0, 1, 0], [], []>} : vector<8x8xbf16>, vector<8x8xbf16>, vector<8x8xf32> -> vector<8x8xf32>
    %79 = vector.broadcast %3 : vector<1x8xf32> to vector<8x8xf32>
    %80 = arith.addf %78, %79 : vector<8x8xf32>
    %cst_27 = arith.constant dense<0xFF800000> : vector<8xf32>
    %81 = vector.multi_reduction <maximumf>, %80, %cst_27 [1] : vector<8x8xf32> to vector<8xf32>
    %82 = vector.shape_cast %81 : vector<8xf32> to vector<8x1xf32>
    %83 = vector.broadcast %82 : vector<8x1xf32> to vector<8x8xf32>
    %84 = arith.subf %80, %83 : vector<8x8xf32>
    %85 = math.exp %84 : vector<8x8xf32>
    %cst_28 = arith.constant dense<0.000000e+00> : vector<8xf32>
    %86 = vector.multi_reduction <add>, %85, %cst_28 [1] : vector<8x8xf32> to vector<8xf32>
    %87 = vector.shape_cast %86 : vector<8xf32> to vector<8x1xf32>
    %88 = arith.truncf %85 : vector<8x8xf32> to vector<8x8xbf16>
    %cst_29 = arith.constant dense<0.000000e+00> : vector<8x8xf32>
    %89 = tpu.matmul %88, %77, %cst_29 {dimension_numbers = #tpu.dot_dimension_numbers<[1], [0], [0], [1], [0, 0, 1, 1], [], []>} : vector<8x8xbf16>, vector<8x8xbf16>, vector<8x8xf32> -> vector<8x8xf32>
    %90 = tpu.reciprocal %87 {approx = true} : vector<8x1xf32> -> vector<8x1xf32>
    %91 = vector.broadcast %90 : vector<8x1xf32> to vector<8x8xf32>
    %92 = arith.mulf %89, %91 : vector<8x8xf32>
    %c0_30 = arith.constant 0 : index
    %c24 = arith.constant 24 : index
    %93 = vector.load %arg16[%c0_30, %c24] : memref<8x32xf32, #tpu.memory_space<vmem>>, vector<8x8xf32>
    tpu.vector_store %arg16[%c0_30, %c24], %92 {strides = array<i32>} : memref<8x32xf32, #tpu.memory_space<vmem>>, vector<8x8xf32>,
    %c0_31 = arith.constant 0 : index
    %c0_32 = arith.constant 0 : index
    %94 = vector.load %arg16[%c0_31, %c0_32] : memref<8x32xf32, #tpu.memory_space<vmem>>, vector<8x32xf32>
    %95 = arith.truncf %94 : vector<8x32xf32> to vector<8x32xbf16>
    %c0_33 = arith.constant 0 : index
    %c0_34 = arith.constant 0 : index
    %96 = vector.load %arg5[%c0_33, %c0_34] : memref<32x32xbf16, #tpu.memory_space<vmem>>, vector<32x32xbf16>
    %cst_35 = arith.constant dense<0.000000e+00> : vector<8x32xf32>
    %97 = tpu.matmul %95, %96, %cst_35 {dimension_numbers = #tpu.dot_dimension_numbers<[1], [0], [0], [1], [0, 0, 1, 1], [], []>} : vector<8x32xbf16>, vector<32x32xbf16>, vector<8x32xf32> -> vector<8x32xf32>
    %c0_36 = arith.constant 0 : index
    %c0_37 = arith.constant 0 : index
    %98 = vector.load %arg6[%c0_36, %c0_37] : memref<1x32xf32, #tpu.memory_space<vmem>>, vector<1x32xf32>
    %99 = vector.broadcast %98 : vector<1x32xf32> to vector<8x32xf32>
    %100 = arith.addf %97, %99 : vector<8x32xf32>
    %101 = arith.addf %100, %1 : vector<8x32xf32>
    %c0_38 = arith.constant 0 : index
    %c0_39 = arith.constant 0 : index
    %102 = vector.load %arg7[%c0_38, %c0_39] : memref<1x32xf32, #tpu.memory_space<vmem>>, vector<1x32xf32>
    %c0_40 = arith.constant 0 : index
    %c0_41 = arith.constant 0 : index
    %103 = vector.load %arg8[%c0_40, %c0_41] : memref<1x32xf32, #tpu.memory_space<vmem>>, vector<1x32xf32>
    %cst_42 = arith.constant dense<0.000000e+00> : vector<8xf32>
    %104 = vector.multi_reduction <add>, %101, %cst_42 [1] : vector<8x32xf32> to vector<8xf32>
    %105 = vector.shape_cast %104 : vector<8xf32> to vector<8x1xf32>
    %cst_43 = arith.constant 3.200000e+01 : f32
    %106 = vector.broadcast %cst_43 : f32 to vector<8x1xf32>
    %107 = arith.divf %105, %106 : vector<8x1xf32>
    %108 = vector.broadcast %107 : vector<8x1xf32> to vector<8x32xf32>
    %109 = arith.subf %101, %108 : vector<8x32xf32>
    %110 = arith.mulf %109, %109 : vector<8x32xf32>
    %cst_44 = arith.constant dense<0.000000e+00> : vector<8xf32>
    %111 = vector.multi_reduction <add>, %110, %cst_44 [1] : vector<8x32xf32> to vector<8xf32>
    %112 = vector.shape_cast %111 : vector<8xf32> to vector<8x1xf32>
    %cst_45 = arith.constant 3.200000e+01 : f32
    %113 = vector.broadcast %cst_45 : f32 to vector<8x1xf32>
    %114 = arith.divf %112, %113 : vector<8x1xf32>
    %115 = vector.broadcast %107 : vector<8x1xf32> to vector<8x32xf32>
    %116 = arith.subf %101, %115 : vector<8x32xf32>
    %cst_46 = arith.constant 9.99999974E-6 : f32
    %117 = vector.broadcast %cst_46 : f32 to vector<8x1xf32>
    %118 = arith.addf %114, %117 : vector<8x1xf32>
    %119 = math.rsqrt %118 : vector<8x1xf32>
    %120 = vector.broadcast %119 : vector<8x1xf32> to vector<8x32xf32>
    %121 = arith.mulf %116, %120 : vector<8x32xf32>
    %122 = vector.broadcast %102 : vector<1x32xf32> to vector<8x32xf32>
    %123 = arith.mulf %121, %122 : vector<8x32xf32>
    %124 = vector.broadcast %103 : vector<1x32xf32> to vector<8x32xf32>
    %125 = arith.addf %123, %124 : vector<8x32xf32>
    %126 = arith.truncf %125 : vector<8x32xf32> to vector<8x32xbf16>
    %c0_47 = arith.constant 0 : index
    %c0_48 = arith.constant 0 : index
    %127 = vector.load %arg9[%c0_47, %c0_48] : memref<32x64xbf16, #tpu.memory_space<vmem>>, vector<32x64xbf16>
    %cst_49 = arith.constant dense<0.000000e+00> : vector<8x64xf32>
    %128 = tpu.matmul %126, %127, %cst_49 {dimension_numbers = #tpu.dot_dimension_numbers<[1], [0], [0], [1], [0, 0, 1, 1], [], []>} : vector<8x32xbf16>, vector<32x64xbf16>, vector<8x64xf32> -> vector<8x64xf32>
    %c0_50 = arith.constant 0 : index
    %c0_51 = arith.constant 0 : index
    %129 = vector.load %arg10[%c0_50, %c0_51] : memref<1x64xf32, #tpu.memory_space<vmem>>, vector<1x64xf32>
    %130 = vector.broadcast %129 : vector<1x64xf32> to vector<8x64xf32>
    %131 = arith.addf %128, %130 : vector<8x64xf32>
    %cst_52 = arith.constant 5.000000e-01 : f32
    %132 = vector.broadcast %cst_52 : f32 to vector<8x64xf32>
    %133 = arith.mulf %132, %131 : vector<8x64xf32>
    %cst_53 = arith.constant 4.471500e-02 : f32
    %134 = vector.broadcast %cst_53 : f32 to vector<8x64xf32>
    %135 = arith.mulf %134, %131 : vector<8x64xf32>
    %136 = arith.mulf %135, %131 : vector<8x64xf32>
    %137 = arith.mulf %136, %131 : vector<8x64xf32>
    %138 = arith.addf %131, %137 : vector<8x64xf32>
    %cst_54 = arith.constant 0.797884583 : f32
    %139 = vector.broadcast %cst_54 : f32 to vector<8x64xf32>
    %140 = arith.mulf %139, %138 : vector<8x64xf32>
    %141 = math.tanh %140 : vector<8x64xf32>
    %cst_55 = arith.constant 1.000000e+00 : f32
    %142 = vector.broadcast %cst_55 : f32 to vector<8x64xf32>
    %143 = arith.addf %142, %141 : vector<8x64xf32>
    %144 = arith.mulf %133, %143 : vector<8x64xf32>
    %145 = arith.truncf %144 : vector<8x64xf32> to vector<8x64xbf16>
    %c0_56 = arith.constant 0 : index
    %c0_57 = arith.constant 0 : index
    %146 = vector.load %arg11[%c0_56, %c0_57] : memref<64x32xbf16, #tpu.memory_space<vmem>>, vector<64x32xbf16>
    %cst_58 = arith.constant dense<0.000000e+00> : vector<8x32xf32>
    %147 = tpu.matmul %145, %146, %cst_58 {dimension_numbers = #tpu.dot_dimension_numbers<[1], [0], [0], [1], [0, 0, 1, 1], [], []>} : vector<8x64xbf16>, vector<64x32xbf16>, vector<8x32xf32> -> vector<8x32xf32>
    %c0_59 = arith.constant 0 : index
    %c0_60 = arith.constant 0 : index
    %148 = vector.load %arg12[%c0_59, %c0_60] : memref<1x32xf32, #tpu.memory_space<vmem>>, vector<1x32xf32>
    %149 = vector.broadcast %148 : vector<1x32xf32> to vector<8x32xf32>
    %150 = arith.addf %147, %149 : vector<8x32xf32>
    %151 = arith.addf %150, %125 : vector<8x32xf32>
    %c0_61 = arith.constant 0 : index
    %c0_62 = arith.constant 0 : index
    %152 = vector.load %arg13[%c0_61, %c0_62] : memref<1x32xf32, #tpu.memory_space<vmem>>, vector<1x32xf32>
    %c0_63 = arith.constant 0 : index
    %c0_64 = arith.constant 0 : index
    %153 = vector.load %arg14[%c0_63, %c0_64] : memref<1x32xf32, #tpu.memory_space<vmem>>, vector<1x32xf32>
    %cst_65 = arith.constant dense<0.000000e+00> : vector<8xf32>
    %154 = vector.multi_reduction <add>, %151, %cst_65 [1] : vector<8x32xf32> to vector<8xf32>
    %155 = vector.shape_cast %154 : vector<8xf32> to vector<8x1xf32>
    %cst_66 = arith.constant 3.200000e+01 : f32
    %156 = vector.broadcast %cst_66 : f32 to vector<8x1xf32>
    %157 = arith.divf %155, %156 : vector<8x1xf32>
    %158 = vector.broadcast %157 : vector<8x1xf32> to vector<8x32xf32>
    %159 = arith.subf %151, %158 : vector<8x32xf32>
    %160 = arith.mulf %159, %159 : vector<8x32xf32>
    %cst_67 = arith.constant dense<0.000000e+00> : vector<8xf32>
    %161 = vector.multi_reduction <add>, %160, %cst_67 [1] : vector<8x32xf32> to vector<8xf32>
    %162 = vector.shape_cast %161 : vector<8xf32> to vector<8x1xf32>
    %cst_68 = arith.constant 3.200000e+01 : f32
    %163 = vector.broadcast %cst_68 : f32 to vector<8x1xf32>
    %164 = arith.divf %162, %163 : vector<8x1xf32>
    %165 = vector.broadcast %157 : vector<8x1xf32> to vector<8x32xf32>
    %166 = arith.subf %151, %165 : vector<8x32xf32>
    %cst_69 = arith.constant 9.99999974E-6 : f32
    %167 = vector.broadcast %cst_69 : f32 to vector<8x1xf32>
    %168 = arith.addf %164, %167 : vector<8x1xf32>
    %169 = math.rsqrt %168 : vector<8x1xf32>
    %170 = vector.broadcast %169 : vector<8x1xf32> to vector<8x32xf32>
    %171 = arith.mulf %166, %170 : vector<8x32xf32>
    %172 = vector.broadcast %152 : vector<1x32xf32> to vector<8x32xf32>
    %173 = arith.mulf %171, %172 : vector<8x32xf32>
    %174 = vector.broadcast %153 : vector<1x32xf32> to vector<8x32xf32>
    %175 = arith.addf %173, %174 : vector<8x32xf32>
    %c0_70 = arith.constant 0 : index
    %c0_71 = arith.constant 0 : index
    %c0_72 = arith.constant 0 : index
    %176 = vector.load %arg15[%c0_70, %c0_71, %c0_72] : memref<1x8x32xf32, #tpu.memory_space<vmem>>, vector<1x8x32xf32>
    %177 = vector.shape_cast %176 : vector<1x8x32xf32> to vector<8x32xf32>
    %178 = vector.shape_cast %175 : vector<8x32xf32> to vector<1x8x32xf32>
    tpu.vector_store %arg15[%c0_70, %c0_71, %c0_72], %178 {strides = array<i32>} : memref<1x8x32xf32, #tpu.memory_space<vmem>>, vector<1x8x32xf32>,
    return
  }
  func.func @transform_0(%arg0: i32) -> (i32, i32, i32) {
    %c0_i32 = arith.constant 0 : i32
    %c0_i32_0 = arith.constant 0 : i32
    %c0_i32_1 = arith.constant 0 : i32
    return %arg0, %c0_i32, %c0_i32_0 : i32, i32, i32
  }
  func.func @transform_1(%arg0: i32) -> (i32, i32, i32) {
    %c0_i32 = arith.constant 0 : i32
    %c0_i32_0 = arith.constant 0 : i32
    %c0_i32_1 = arith.constant 0 : i32
    return %arg0, %c0_i32, %c0_i32_0 : i32, i32, i32
  }
  func.func @transform_2(%arg0: i32) -> (i32, i32) {
    %c0_i32 = arith.constant 0 : i32
    %c0_i32_0 = arith.constant 0 : i32
    %c0_i32_1 = arith.constant 0 : i32
    return %c0_i32, %c0_i32_0 : i32, i32
  }
  func.func @transform_3(%arg0: i32) -> (i32, i32) {
    %c0_i32 = arith.constant 0 : i32
    %c0_i32_0 = arith.constant 0 : i32
    %c0_i32_1 = arith.constant 0 : i32
    return %c0_i32, %c0_i32_0 : i32, i32
  }
  func.func @transform_4(%arg0: i32) -> (i32, i32) {
    %c0_i32 = arith.constant 0 : i32
    %c0_i32_0 = arith.constant 0 : i32
    %c0_i32_1 = arith.constant 0 : i32
    return %c0_i32, %c0_i32_0 : i32, i32
  }
  func.func @transform_5(%arg0: i32) -> (i32, i32) {
    %c0_i32 = arith.constant 0 : i32
    %c0_i32_0 = arith.constant 0 : i32
    %c0_i32_1 = arith.constant 0 : i32
    return %c0_i32, %c0_i32_0 : i32, i32
  }
  func.func @transform_6(%arg0: i32) -> (i32, i32) {
    %c0_i32 = arith.constant 0 : i32
    %c0_i32_0 = arith.constant 0 : i32
    %c0_i32_1 = arith.constant 0 : i32
    return %c0_i32, %c0_i32_0 : i32, i32
  }
  func.func @transform_7(%arg0: i32) -> (i32, i32) {
    %c0_i32 = arith.constant 0 : i32
    %c0_i32_0 = arith.constant 0 : i32
    %c0_i32_1 = arith.constant 0 : i32
    return %c0_i32, %c0_i32_0 : i32, i32
  }
  func.func @transform_8(%arg0: i32) -> (i32, i32) {
    %c0_i32 = arith.constant 0 : i32
    %c0_i32_0 = arith.constant 0 : i32
    %c0_i32_1 = arith.constant 0 : i32
    return %c0_i32, %c0_i32_0 : i32, i32
  }
  func.func @transform_9(%arg0: i32) -> (i32, i32) {
    %c0_i32 = arith.constant 0 : i32
    %c0_i32_0 = arith.constant 0 : i32
    %c0_i32_1 = arith.constant 0 : i32
    return %c0_i32, %c0_i32_0 : i32, i32
  }
  func.func @transform_10(%arg0: i32) -> (i32, i32) {
    %c0_i32 = arith.constant 0 : i32
    %c0_i32_0 = arith.constant 0 : i32
    %c0_i32_1 = arith.constant 0 : i32
    return %c0_i32, %c0_i32_0 : i32, i32
  }
  func.func @transform_11(%arg0: i32) -> (i32, i32) {
    %c0_i32 = arith.constant 0 : i32
    %c0_i32_0 = arith.constant 0 : i32
    %c0_i32_1 = arith.constant 0 : i32
    return %c0_i32, %c0_i32_0 : i32, i32
  }
  func.func @transform_12(%arg0: i32) -> (i32, i32) {
    %c0_i32 = arith.constant 0 : i32
    %c0_i32_0 = arith.constant 0 : i32
    %c0_i32_1 = arith.constant 0 : i32
    return %c0_i32, %c0_i32_0 : i32, i32
  }
  func.func @transform_13(%arg0: i32) -> (i32, i32) {
    %c0_i32 = arith.constant 0 : i32
    %c0_i32_0 = arith.constant 0 : i32
    %c0_i32_1 = arith.constant 0 : i32
    return %c0_i32, %c0_i32_0 : i32, i32
  }
  func.func @transform_14(%arg0: i32) -> (i32, i32, i32) {
    %c0_i32 = arith.constant 0 : i32
    %c0_i32_0 = arith.constant 0 : i32
    %c0_i32_1 = arith.constant 0 : i32
    return %arg0, %c0_i32, %c0_i32_0 : i32, i32, i32
  }
}

</mosaic_0001>

<bundles_post_ra>
// kernel: tpu_custom_call.1
= control target key start
LH: loop header
LB: loop body
LE: loop exit
PB: predicated region body
PF: predicated region fallthrough
CT: control target
= control target key end

     0   :  { %s1779_s0 = inlined_call_operand.vmem [shape: f32[2,8,32], index: 0, kind: input, shape index: {}]   ;;  %s1780_s1 = inlined_call_operand.hbm [shape: f32[2,1,8], index: 1, kind: input, shape index: {}]   ;;  %s1781_s2 = inlined_call_operand.vmem [shape: bf16[32,96], index: 2, kind: input, shape index: {}]   ;;  %s1782_s3 = inlined_call_operand.vmem [shape: f32[1,96], index: 3, kind: input, shape index: {}]   ;;  %s1783_s4 = inlined_call_operand.vmem [shape: bf16[32,32], index: 4, kind: input, shape index: {}]   ;;  %s1784_s5 = inlined_call_operand.vmem [shape: f32[1,32], index: 5, kind: input, shape index: {}]   ;;  %s1785_s6 = inlined_call_operand.vmem [shape: f32[1,32], index: 6, kind: input, shape index: {}]   ;;  %s1786_s7 = inlined_call_operand.vmem [shape: f32[1,32], index: 7, kind: input, shape index: {}]   ;;  %s1787_s8 = inlined_call_operand.hbm [shape: bf16[32,64], index: 8, kind: input, shape index: {}]   ;;  %s1788_s9 = inlined_call_operand.vmem [shape: f32[1,64], index: 9, kind: input, shape index: {}]   ;;  %s1789_s10 = inlined_call_operand.vmem [shape: bf16[64,32], index: 10, kind: input, shape index: {}]   ;;  %s1790_s11 = inlined_call_operand.vmem [shape: f32[1,32], index: 11, kind: input, shape index: {}]   ;;  %s1791_s12 = inlined_call_operand.vmem [shape: f32[1,32], index: 12, kind: input, shape index: {}]   ;;  %s1792_s13 = inlined_call_operand.vmem [shape: f32[1,32], index: 13, kind: input, shape index: {}]   ;;  %s1793_s14 = inlined_call_operand.hbm [shape: f32[2,8,32], index: 14, kind: output, shape index: {}]  }
   0x1   :  { %1799 = sst [smem:[#allocation17_spill]] %s1787_s8 }
   0x2   :  { %1800 = sst [smem:[#allocation18_spill]] %s1792_s13 }
   0x3   :  { %19 = vsyncpa [#allocation4], 0 }
   0x4   :  { %21 = vsyncpa [#allocation4 + $0x1], 0 }
   0x5   :  { %22 = vsyncpa [#allocation7], 0 }
   0x6   :  { %23 = vsyncpa [#allocation5], 0 }
   0x7   :  { %25 = vsyncpa [#allocation5 + $0x1], 0  ;;  %s1533_s29 = smov 0   ;;  %s1535_s30 = smov 0  }
   0x8   :  { %s1537_s15 = smov 0   ;;  %s1539_s16 = smov 0  }
   0x9 LB: > { %1801 = sst [smem:[#allocation12_spill]] %s1426_s29  ;;  %s1557_s20 = sadd.s32 4294967295, %s1438_s16   ;;  %s1438_s16 = sphi %s1539_s16, %s1816_s16   ;;  %s1434_s15 = sphi %s1537_s15, %s1818_s15   ;;  %s1430_s30 = sphi %s1535_s30, %s1820_s30   ;;  %s1426_s29 = sphi %s1533_s29, %s1819_s29  }
   0xa   : > { %1802 = sst [smem:[#allocation13_spill]] %s1434_s15  ;;  %p1128_p0 = scmp.ge.s32.totalorder %s1438_s16, 1 }
   0xb   : > { %1803 = sst [smem:[#allocation14_spill]] %s1438_s16  ;;  %p78_p1 = scmp.eq.s32.totalorder %s1557_s20, 0 }
   0xc   : > { %s1804_s8 = sld [smem:[#allocation17_spill]]  ;;  %p366_p2 = scmp.lt.s32.totalorder %s1438_s16, 3 }
   0xd   : > { %s1440_s22 = smov [#allocation6]   ;;  %s1441_s24 = smov 64  }
   0xe   : > { %p1562_p3 = pnand %p1128_p0, %p366_p2  ;;  %s397_s23 = sshll.u32 %s1440_s22, 4  ;;  %s398_s23 = int_to_ptr.vmem [resolvable:$true] %s397_s23 }
   0xf   : > { %s1442_s25 = smov 4   ;;  %s1127_s26 = sadd.s32 4294967294, %s1438_s16  }
  0x10   : > { %p1209_p4 = pneg %p1562_p3  ;;  %s1573_s27 = sadd.s32 1, %s1438_s16  }
  0x11   : > { %1806 = sst [smem:[#allocation15_spill]] %s1573_s27  ;;  %s64_s28 = sadd.s32 1, %s1434_s15 }
  0x12   : > { %s395_s19 = sshll.u32 %s1804_s8, 4  ;;  %p1210_p6 = pnand %p1209_p4, %p78_p1  ;;  %s396_s19 = int_to_ptr.hbm [resolvable:$true] %s395_s19 }
  0x13   : > { %s61_s17 = ssub.s32 %s1438_s16, %s1573_s27  ;;  %p71_p7 = scmp.ne.s32.totalorder %s1434_s15, %s1430_s30 }
  0x14   : > { %1212 = dma.hbm_to_vmem [thread:$0]  (!%p1210_p6), %s396_s19, 256, %s398_s23, [#allocation7], %s1441_s24, %s1441_s24, %s1442_s25  }
  0x15   : > { %p62_p8 = scmp.eq.s32.totalorder %s61_s17, 0  ;;  %p72_p9 = scmp.eq.s32.totalorder %s1438_s16, 0 }
  0x16   : > { %p77_p10 = scmp.ne.s32.totalorder %s1430_s30, %s1426_s29  ;;  %p353_p11 = scmp.eq.s32.totalorder %s1557_s20, 1 }
  0x17   : > { %s1585_s18 = scalar_select %p62_p8, %s1434_s15, %s64_s28  }
  0x18   : > { %p1589_p12 = por %p78_p1, %p77_p10  ;;  %p1593_p13 = por %p353_p11, %p71_p7 }
  0x19   : > { %1807 = sst [smem:[#allocation16_spill]] %s1585_s18  ;;  %p359_p0 = scmp.eq.s32.totalorder %s1127_s26, 1 }
  0x1a   : > { %p73_p2 = por %p72_p9, %p71_p7  ;;  %s433_s23 = sand.u32 1, %s1434_s15  }
  0x1b   : > { %p1598_p4 = por %p359_p0, %p77_p10  ;;  %p1222_p6 = scmp.lt.s32.totalorder %s1438_s16, 2 }
  0x1c   : > { %s439_s17 = scalar_lea.hbm %s1780_s1, %s1438_s16  ;;  %s436_s18 = scalar_lea.vmem [#allocation3], %s433_s23 }
  0x1d   : > { %s441_s8 = sshll.u32 %s439_s17, 4  ;;  %s443_s27 = sshll.u32 %s436_s18, 4  ;;  %s442_s8 = int_to_ptr.hbm [resolvable:$true] %s441_s8  ;;  %s444_s27 = int_to_ptr.vmem [resolvable:$true] %s443_s27 }
  0x1e   : > { %p1607_p8 = pnand %p1222_p6, %p73_p2  ;;  %s434_s26 = scalar_lea.sflag [#allocation4], %s433_s23 }
  0x1f   : > { %s1338_s15 = sshra.s32 %s442_s8, 4  ;;  %s1345_s18 = scalar_lea.hbm %s1780_s1, 2  ;;  %s1339_s15 = int_to_ptr.hbm [resolvable:$true] %s1338_s15 }
  0x20   : > { %s1340_s13 = scalar_lea.hbm %s1339_s15, 1  ;;  %p1342_p9 = pneg %p1607_p8 }
  0x21   : > { %p1341_p7 = scmp.ne.s32.totalorder %s1339_s15, %s1340_s13  ;;  %p1346_p0 = scmp.lt.s32.totalorder %s1339_s15, %s1780_s1 }
  0x22   : > { %p1347_p2 = scmp.lt.s32.totalorder %s1345_s18, %s1340_s13 }
  0x23   : > { %p1343_p10 = pnand %p1342_p9, %p1341_p7 }
  0x24   : > { %p1348_p6 = por %p1347_p2, %p1346_p0 }
  0x25   : > { %p1344_p11 = pneg %p1343_p10 }
  0x27   : > { %p1349_p5 = pnand %p1348_p6, %p1344_p11 }
  0x29   : > { %1352 = shalt.err (!%p1349_p5)
}
  0x2a   : > { %1216 = dma.hbm_to_vmem [thread:$0]  (!%p1607_p8), %s442_s8, 16, %s444_s27, %s434_s26  }
  0x2b   : > { %452 = sbr.rel (%p1562_p3) target bundleno = 1824 (0x720), region = 76  ;;  %s1624_s23 = sand.u32 (!%p1562_p3), 1, %s1430_s30  }
  0x2c   : > { %s455_s25 = scalar_lea.sflag (!%p1562_p3), [#allocation4], %s1624_s23  ;;  %s457_s28 = scalar_lea.vmem (!%p1562_p3), [#allocation3], %s1624_s23 }
  0x30   : > { %1413 = dma.done.wait (%p1589_p12), %s455_s25, 16  }
  0x31   : > { %1415 = vsyncadd (%p1589_p12), %s455_s25, 4294967280 }
  0x32   : > { %1417 = dma.done.wait (%p78_p1), [#allocation7], 256  }
  0x33   : > { %1419 = vsyncadd (%p78_p1), [#allocation7], 4294967040  ;;  %p511_p3 = scmp.lt.s32.totalorder %s1557_s20, 1  ;;  %v1192_v0 = vld [vmem:[%s1781_s2 + $0x8] sm:$0xff]  ;;  %v1191_v1 = vld [vmem:[%s1781_s2] sm:$0xff]  ;;  %vm539_vm0 = vcmask 261120  }
  0x34   : > { %549 = vmatpush.bf16.msra.mxu0 %v1192_v0  ;;  %v1275_v4 = vld [vmem:[%s1782_s3] ss:$0 sm:$0xff]  ;;  %s1443_s25 = smov 96   ;;  %s1446_s29 = smov 88   ;;  %vm567_vm1 = vcmask 64512   ;;  %vm602_vm2 = vcmask 1043456  }
  0x35   : > { %s512_s8 = scalar_select %p511_p3, %s1557_s20, 1  ;;  %v1276_v30 = vld [vmem:[%s457_s28] ss:$0 sm:$0xff]  ;;  %vm685_vm3 = vcmask 130112   ;;  %vm747_vm4 = vcmask 195712   ;;  %vm809_vm5 = vcmask 261312  }
  0x36   : > { %s1447_s15 = smov 80   ;;  %s1449_s21 = smov 112   ;;  %vm972_vm10 = vcmask 523264  }
  0x37   : > { %s1134_s13 = sshll.u32 %s512_s8, 3  ;;  %s1444_s8 = smov 104  }
  0x38   : > { %s514_s16 = scalar_lea.vmem %s1779_s0, %s1134_s13  ;;  %550 = vmatpush.bf16.msra.mxu0 %v1191_v1  ;;  %s1445_s13 = smov 120  }
  0x39   : > { %v1647_v2 = vld [vmem:[%s514_s16] sm:$0xff]  ;;  %s1448_s16 = smov 72   ;;  %s1450_s27 = smov 64  }
  0x3a   : > { %v518_v3 = vpack.c.bf16 %v1647_v2, %v1647_v2  ;;  %s1451_s22 = smov 56   ;;  %s1452_s28 = smov 48  }
  0x3b   : > { %s1453_s26 = smov 40   ;;  %s1454_s18 = smov 8  }
  0x3c   : > { %1143 = vmatmul.msk.bf16.vlgmr.msra.gmra.mxu0 %vm539_vm0, %v518_v3  ;;  %s1455_s17 = smov 16  }
  0xb9   : > { %v552_v5 = vpop.f32.mrf.mxu0 }
  0xba   : > { %v553_v6 = vadd.f32 %v1275_v4, %v552_v5 }
  0xbc   : > { %v556_v7 = vmul.f32 0.35355338, %v553_v6  ;;  %v558_v8 = vpack.c.bf16 %v553_v6, %v553_v6 }
  0xbe   : > { %v557_v9 = vpack.c.bf16 %v556_v7, %v556_v7  ;;  %v563_v10 = vunpack.c.l.b16 %v558_v8 }
  0xc0   : > { %v1655_v11 = vpack.c.b16 %v563_v10, %v563_v10  ;;  %v623_v12 = vunpack.c.l.b16 %v557_v9 }
  0xc1   : > { %v554_v13 = vpop.f32.mrf.mxu0 }
  0xc2   : > { %565 = vrot.lane.b32.xlu0 %v1655_v11, %s1443_s25  ;;  %v624_v14 = vpack.c.b16 %v623_v12, %v623_v12  ;;  %s1456_s25 = smov 24  }
  0xc4   : > { %749 = vrot.lane.b32.xlu2 %v624_v14, %s1444_s8  ;;  %625 = vrot.lane.b32.xlu1 %v624_v14, %s1445_s13 }
  0xca   : > { %627 = vrot.lane.b32.xlu0 %v1655_v11, %s1446_s29 }
  0xcc   : > { %689 = vrot.lane.b32.xlu2 %v1655_v11, %s1447_s15  ;;  %751 = vrot.lane.b32.xlu1 %v1655_v11, %s1448_s16 }
  0xd2   : > { %687 = vrot.lane.b32.xlu0 %v624_v14, %s1449_s21  ;;  %s1812_s21 = sld [smem:[#allocation18_spill]] }
  0xd4   : > { %597 = vrot.lane.b32.xlu2 %v1655_v11, %s1450_s27 }
  0xdc   : > { %658 = vrot.lane.b32.xlu2 %v1655_v11, %s1451_s22 }
 0x11e   : > { %v750_v15 = vpop.permute.xlu2 %749 }
 0x126   : > { %v690_v16 = vpop.permute.xlu2 %689 }
 0x127   : > { %v695_v17 = vsel %vm567_vm1, %v690_v16, 0 }
 0x128   : > { %704 = vmatpush.bf16.xpose.msrb.mxu0 %v695_v17 }
 0x12e   : > { %v598_v18 = vpop.permute.xlu2 %597 }
 0x12f   : > { %v604_v19 = vsel %vm602_vm2, %v598_v18, 0 }
 0x130   : > { %613 = vmatpush.bf16.msra.mxu2 %v604_v19 }
 0x134   : > { %v566_v20 = vpop.permute.xlu0 %565 }
 0x135   : > { %v572_v21 = vsel %vm567_vm1, %v566_v20, 0 }
 0x136   : > { %581 = vmatpush.bf16.xpose.msra.mxu1 %v572_v21  ;;  %v659_v22 = vpop.permute.xlu2 %658  ;;  %v626_v23 = vpop.permute.xlu1 %625 }
 0x137   : > { %v664_v24 = vsel %vm602_vm2, %v659_v22, 0 }
 0x138   : > { %673 = vmatpush.bf16.msrb.mxu2 %v664_v24 }
 0x13c   : > { %v628_v25 = vpop.permute.xlu0 %627 }
 0x13d   : > { %1144 = vmatmul.msk.bf16.vlgmr.msra.gmra.mxu1 %vm567_vm1, %v557_v9  ;;  %v633_v26 = vsel %vm567_vm1, %v628_v25, 0 }
 0x13e   : > { %642 = vmatpush.bf16.xpose.msra.mxu3 %v633_v26  ;;  %v752_v27 = vpop.permute.xlu1 %751 }
 0x13f   : > { %v757_v28 = vsel %vm567_vm1, %v752_v27, 0 }
 0x144   : > { %v688_v29 = vpop.permute.xlu0 %687 }
 0x145   : > { %1146 = vmatmul.msk.bf16.vlgmr.msra.gmra.mxu3 %vm567_vm1, %v626_v23  ;;  %1148 = vmatmul.msk.bf16.vlgmr.msrb.gmra.mxu0 %vm567_vm1, %v688_v29 }
 0x146   : > { %766 = vmatpush.bf16.xpose.msrb.mxu3 %v757_v28 }
 0x155   : > { %1150 = vmatmul.msk.bf16.vlgmr.msrb.gmra.mxu3 %vm567_vm1, %v750_v15 }
 0x1ba   : > { %v583_v31 = vpop.f32.mrf.mxu1 }
 0x1bb   : > { %v584_v32 = vadd.f32 %v1276_v30, %v583_v31 }
 0x1bd   : > { %v587_v33 = vsel %vm567_vm1, %v584_v32, -inf }
 0x1be   : > { %588 = vmax.xlane.f32.xlu1 %v587_v33  ;;  %v1193_v33 = vld [vmem:[%s1783_s4] sm:$0xff] }
 0x1c2   : > { %v585_v34 = vpop.f32.mrf.mxu1  ;;  %v706_v35 = vpop.f32.mrf.mxu0 }
 0x1c3   : > { %v707_v36 = vadd.f32 %v1276_v30, %v706_v35 }
 0x1c5   : > { %v710_v37 = vsel %vm567_vm1, %v707_v36, -inf }
 0x1c6   : > { %711 = vmax.xlane.f32.xlu1 %v710_v37 }
 0x1c8   : > { %v644_v38 = vpop.f32.mrf.mxu3 }
 0x1c9   : > { %v645_v39 = vadd.f32 %v1276_v30, %v644_v38 }
 0x1ca   : > { %v708_v40 = vpop.f32.mrf.mxu0 }
 0x1cb   : > { %v648_v41 = vsel %vm567_vm1, %v645_v39, -inf }
 0x1cc   : > { %649 = vmax.xlane.f32.xlu0 %v648_v41 }
 0x1d0   : > { %v646_v42 = vpop.f32.mrf.mxu3 }
 0x1d8   : > { %v768_v43 = vpop.f32.mrf.mxu3 }
 0x1d9   : > { %v769_v44 = vadd.f32 %v1276_v30, %v768_v43 }
 0x1db   : > { %v772_v45 = vsel %vm567_vm1, %v769_v44, -inf }
 0x1dc   : > { %773 = vmax.xlane.f32.xlu2 %v772_v45  ;;  %v1457_v45 = vmov 32.0  }
 0x1df   : > { %720 = vrot.lane.b32.xlu1 %v1655_v11, %s1452_s28  ;;  %s1024_s28 = scalar_lea.sflag [#allocation5], %s1624_s23 }
 0x1e0   : > { %782 = vrot.lane.b32.xlu0 %v1655_v11, %s1453_s26  ;;  %v770_v46 = vpop.f32.mrf.mxu3  ;;  %s1133_s26 = sshll.u32 %s1624_s23, 3 }
 0x231   : > { %v589_v47 = vpop.xlane.xlu1 %588 }
 0x232   : > { %v590_v48 = vsub.f32 %v584_v32, %v589_v47  ;;  %v1194_v32 = vld [vmem:[%s1783_s4 + $0x8] sm:$0xff] }
 0x233   : > { %842 = vmatpush.bf16.msra.mxu0 %v1194_v32 }
 0x234   : > { %v591_v49 = vmul.f32 1.442695, %v590_v48 }
 0x236   : > { %1284 = vpow2.f32 %v591_v49 }
 0x237   : > { %843 = vmatpush.bf16.msra.mxu0 %v1193_v33 }
 0x239   : > { %v712_v52 = vpop.xlane.xlu1 %711 }
 0x23a   : > { %v713_v55 = vsub.f32 %v707_v36, %v712_v52 }
 0x23c   : > { %v1285_v50 = vpop.eup %1284  ;;  %v714_v57 = vmul.f32 1.442695, %v713_v55 }
 0x23d   : > { %v596_v51 = vpack.c.bf16 %v1285_v50, %v1285_v50  ;;  %v593_v10 = vsel %vm567_vm1, %v1285_v50, 0.0 }
 0x23f   : > { %v650_v53 = vpop.xlane.xlu0 %649  ;;  %1145 = vmatmul.msk.bf16.vlgmr.msra.gmra.mxu2 %vm567_vm1, %v596_v51 }
 0x240   : > { %v651_v54 = vsub.f32 %v645_v39, %v650_v53  ;;  %v1277_v39 = vld [vmem:[%s1784_s5] ss:$0 sm:$0xff] }
 0x242   : > { %v652_v56 = vmul.f32 1.442695, %v651_v54 }
 0x244   : > { %1286 = vpow2.f32 %v652_v56  ;;  %v1196_v56 = vld [vmem:[#allocation6 + $0x8] sm:$0xff] }
 0x245   : > { %1288 = vpow2.f32 %v714_v57  ;;  %v1195_v57 = vld [vmem:[#allocation6] sm:$0xff] }
 0x24a   : > { %v1287_v58 = vpop.eup %1286 }
 0x24b   : > { %v654_v59 = vsel %vm567_vm1, %v1287_v58, 0.0  ;;  %v657_v60 = vpack.c.bf16 %v1287_v58, %v1287_v58  ;;  %v1289_v62 = vpop.eup %1288 }
 0x24c   : > { %655 = vadd.xlane.f32.xlu2 %v654_v59  ;;  %v716_v6 = vsel %vm567_vm1, %v1289_v62, 0.0  ;;  %v719_v7 = vpack.c.bf16 %v1289_v62, %v1289_v62 }
 0x24f   : > { %v774_v61 = vpop.xlane.xlu2 %773  ;;  %1147 = vmatmul.msk.bf16.vlgmr.msrb.gmra.mxu2 %vm567_vm1, %v657_v60 }
 0x250   : > { %v775_v63 = vsub.f32 %v769_v44, %v774_v61 }
 0x251   : > { %v721_v0 = vpop.permute.xlu1 %720 }
 0x252   : > { %v776_v1 = vmul.f32 1.442695, %v775_v63  ;;  %v783_v3 = vpop.permute.xlu0 %782  ;;  %v726_v4 = vsel %vm602_vm2, %v721_v0, 0 }
 0x253   : > { %v788_v5 = vsel %vm602_vm2, %v783_v3, 0  ;;  %735 = vmatpush.bf16.msrb.mxu1 %v726_v4  ;;  %v1278_v4 = vld [vmem:[%s1785_s6] ss:$0 sm:$0xff] }
 0x254   : > { %1290 = vpow2.f32 %v776_v1  ;;  %797 = vmatpush.bf16.msra.mxu2 %v788_v5  ;;  %717 = vadd.xlane.f32.xlu2 %v716_v6  ;;  %v1279_v6 = vld [vmem:[%s1786_s7] ss:$0 sm:$0xff] }
 0x256   : > { %1149 = vmatmul.msk.bf16.vlgmr.msrb.gmra.mxu1 %vm567_vm1, %v719_v7 }
 0x257   : > { %919 = vmatpush.bf16.msra.mxu1 %v1196_v56 }
 0x25a   : > { %v1291_v8 = vpop.eup %1290 }
 0x25b   : > { %v778_v9 = vsel %vm567_vm1, %v1291_v8, 0.0  ;;  %v781_v11 = vpack.c.bf16 %v1291_v8, %v1291_v8  ;;  %920 = vmatpush.bf16.msra.mxu1 %v1195_v57 }
 0x25c   : > { %779 = vadd.xlane.f32.xlu0 %v778_v9  ;;  %594 = vadd.xlane.f32.xlu2 %v593_v10 }
 0x25f   : > { %1151 = vmatmul.msk.bf16.vlgmr.msra.gmra.mxu2 %vm567_vm1, %v781_v11  ;;  %v1200_v11 = vld [vmem:[%s1789_s10 + $0x18] sm:$0xff] }
 0x260   : > { %980 = vmatpush.bf16.msra.mxu3 %v1200_v11 }
 0x2bf   : > { %v656_v12 = vpop.xlane.xlu2 %655 }
 0x2c0   : > { %1292 = vrcp.f32 %v656_v12  ;;  %v1199_v12 = vld [vmem:[%s1789_s10 + $0x10] sm:$0xff] }
 0x2c1   : > { %981 = vmatpush.bf16.msra.mxu3 %v1199_v12 }
 0x2c2   : > { %v615_v13 = vpop.f32.mrf.mxu2 }
 0x2c6   : > { %v1293_v17 = vpop.eup %1292 }
 0x2c7   : > { %v718_v14 = vpop.xlane.xlu2 %717 }
 0x2c8   : > { %1294 = vrcp.f32 %v718_v14  ;;  %v1197_v14 = vld [vmem:[%s1789_s10] sm:$0xff] }
 0x2ca   : > { %v617_v15 = vpop.f32.mrf.mxu2 }
 0x2cb   : > { %v1280_v15 = vld [vmem:[%s1788_s9] ss:$0 sm:$0xff] }
 0x2ce   : > { %v1295_v19 = vpop.eup %1294 }
 0x2cf   : > { %v595_v16 = vpop.xlane.xlu2 %594  ;;  %v780_v25 = vpop.xlane.xlu0 %779 }
 0x2d0   : > { %1296 = vrcp.f32 %v595_v16 }
 0x2d1   : > { %1298 = vrcp.f32 %v780_v25 }
 0x2d2   : > { %v675_v18 = vpop.f32.mrf.mxu2  ;;  %1300 = vrcp.f32 %v1457_v45 }
 0x2d3   : > { %v680_v20 = vmul.f32 %v1293_v17, %v675_v18  ;;  %v737_v21 = vpop.f32.mrf.mxu1 }
 0x2d4   : > { %v742_v22 = vmul.f32 %v1295_v19, %v737_v21 }
 0x2d5   : > { %682 = vrot.lane.b32.xlu1 %v680_v20, %s1454_s18  ;;  %s1188_s18 = sshll.u32 %s1557_s20, 3  ;;  %s510_s20 = scalar_lea.vmem [#allocation8], %s1133_s26 }
 0x2d6   : > { %744 = vrot.lane.b32.xlu2 %v742_v22, %s1455_s17  ;;  %v1297_v23 = vpop.eup %1296  ;;  %s1034_s29 = scalar_lea.hbm %s1793_s14, %s1188_s18  ;;  %s1036_s27 = sshll.u32 %s510_s20, 4  ;;  %s1037_s27 = int_to_ptr.vmem [resolvable:$true] %s1036_s27 }
 0x2d7   : > { %v620_v24 = vmul.f32 %v1297_v23, %v615_v13  ;;  %v1299_v28 = vpop.eup %1298  ;;  %v1198_v13 = vld [vmem:[%s1789_s10 + $0x8] sm:$0xff]  ;;  %s1038_s22 = sshll.u32 %s1034_s29, 4  ;;  %s1388_s26 = scalar_lea.hbm %s1793_s14, 16  ;;  %s1039_s22 = int_to_ptr.hbm [resolvable:$true] %s1038_s22 }
 0x2d8   : > { %v1301_v46 = vpop.eup %1300  ;;  %982 = vmatpush.bf16.msra.mxu3 %v1198_v13  ;;  %s1382_s17 = sshra.s32 %s1039_s22, 4  ;;  %s1383_s17 = int_to_ptr.hbm [resolvable:$true] %s1382_s17 }
 0x2d9   : > { %621 = vst.msk [vmem:[#allocation2] sm:$0xff] %vm567_vm1, %v620_v24  ;;  %v856_v47 = vmul.f32 32.0, %v1301_v46  ;;  %vm860_vm6 = vweird.f32 %v1301_v46  ;;  %s1384_s18 = scalar_lea.hbm %s1383_s17, 8  ;;  %p1389_p8 = scmp.lt.s32.totalorder %s1383_s17, %s1793_s14 }
 0x2da   : > { %v677_v26 = vpop.f32.mrf.mxu2  ;;  %p1385_p1 = scmp.ne.s32.totalorder %s1383_s17, %s1384_s18  ;;  %p1390_p7 = scmp.lt.s32.totalorder %s1388_s26, %s1384_s18 }
 0x2db   : > { %v739_v27 = vpop.f32.mrf.mxu1  ;;  %v857_v48 = vsub.f32 1.0, %v856_v47 }
 0x2dc   : > { %983 = vmatpush.bf16.msra.mxu3 %v1197_v14  ;;  %p1386_p5 = pnand %p1385_p1, %p1593_p13  ;;  %p1391_p9 = por %p1390_p7, %p1389_p8 }
 0x2dd   : > { %v858_v49 = vmul.f32 %v1301_v46, %v857_v48 }
 0x2de   : > { %p1387_p12 = pneg %p1386_p5 }
 0x2df   : > { %v859_v50 = vadd.f32 %v1301_v46, %v858_v49  ;;  %v1282_v49 = vld [vmem:[%s1791_s12] ss:$0 sm:$0xff] }
 0x2e0   : > { %p1392_p10 = pnand %p1391_p9, %p1387_p12 }
 0x2e1   : > { %v1704_v51 = vsel %vm860_vm6, %v1301_v46, %v859_v50 }
 0x2e2   : > { %v799_v29 = vpop.f32.mrf.mxu2 }
 0x2e3   : > { %v804_v30 = vmul.f32 %v1299_v28, %v799_v29  ;;  %v1281_v29 = vld [vmem:[%s1790_s11] ss:$0 sm:$0xff] }
 0x2e5   : > { %806 = vrot.lane.b32.xlu1 %v804_v30, %s1456_s25 }
 0x2ea   : > { %v801_v31 = vpop.f32.mrf.mxu2 }
 0x330   : > { %v745_v35 = vpop.permute.xlu2 %744 }
 0x347   : > { %v683_v34 = vpop.permute.xlu1 %682 }
 0x348   : > { %686 = vst.msk [vmem:[#allocation2] sm:$0xff] %vm685_vm3, %v683_v34 }
 0x349   : > { %748 = vst.msk [vmem:[#allocation2] sm:$0xff] %vm747_vm4, %v745_v35 }
 0x357   : > { %v807_v36 = vpop.permute.xlu1 %806 }
 0x358   : > { %810 = vst.msk [vmem:[#allocation2] sm:$0xff] %vm809_vm5, %v807_v36 }
 0x35f   : > { %v811_v37 = vld [vmem:[#allocation2] sm:$0xff] }
 0x360   : > { %v812_v38 = vpack.c.bf16 %v811_v37, %v811_v37 }
 0x362   : > { %1160 = vmatmul.msk.bf16.vlgmr.msra.gmra.mxu0 %vm539_vm0, %v812_v38 }
 0x3df   : > { %v845_v40 = vpop.f32.mrf.mxu0 }
 0x3e0   : > { %v846_v41 = vadd.f32 %v1277_v39, %v845_v40 }
 0x3e2   : > { %v849_v42 = vadd.f32 %v846_v41, %v1647_v2 }
 0x3e4   : > { %v852_v43 = vsel %vm539_vm0, %v849_v42, 0.0 }
 0x3e5   : > { %853 = vadd.xlane.f32.xlu1 %v852_v43 }
 0x3e7   : > { %v847_v44 = vpop.f32.mrf.mxu0 }
 0x458   : > { %v854_v52 = vpop.xlane.xlu1 %853 }
 0x459   : > { %v862_v53 = vmul.f32 %v1704_v51, %v854_v52  ;;  %v1283_v52 = vld [vmem:[%s1812_s21] ss:$0 sm:$0xff] }
 0x45b   : > { %v863_v54 = vsub.f32 %v849_v42, %v862_v53 }
 0x45d   : > { %v864_v55 = vmul.f32 %v863_v54, %v863_v54 }
 0x45f   : > { %v865_v2 = vsel %vm539_vm0, %v864_v55, 0.0 }
 0x460   : > { %866 = vadd.xlane.f32.xlu2 %v865_v2 }
 0x4d3   : > { %v867_v58 = vpop.xlane.xlu2 %866 }
 0x4d4   : > { %v868_v59 = vmul.f32 %v867_v58, %v1704_v51 }
 0x4d6   : > { %v869_v60 = vadd.f32 1e-05, %v868_v59 }
 0x4d8   : > { %1302 = vrsqrt.f32 %v869_v60  ;;  %vm876_vm8 = vweird.f32 %v869_v60 }
 0x4de   : > { %v1303_v61 = vpop.eup %1302 }
 0x4df   : > { %v871_v62 = vmul.f32 %v1303_v61, %v869_v60  ;;  %vm877_vm7 = vweird.f32 %v1303_v61 }
 0x4e0   : > { %vm878_vm9 = vmor %vm876_vm8, %vm877_vm7 }
 0x4e1   : > { %v872_v63 = vmul.f32 %v1303_v61, %v871_v62 }
 0x4e3   : > { %v873_v0 = vmul.f32 0.5, %v872_v63 }
 0x4e5   : > { %v874_v1 = vsub.f32 1.5, %v873_v0 }
 0x4e7   : > { %v875_v3 = vmul.f32 %v1303_v61, %v874_v1 }
 0x4e9   : > { %v879_v5 = vsel %vm878_vm9, %v1303_v61, %v875_v3 }
 0x4ea   : > { %v880_v7 = vmul.f32 %v879_v5, %v863_v54 }
 0x4ec   : > { %v884_v8 = vmul.f32 %v1278_v4, %v880_v7 }
 0x4ee   : > { %v888_v9 = vadd.f32 %v1279_v6, %v884_v8 }
 0x4f0   : > { %v889_v10 = vpack.c.bf16 %v888_v9, %v888_v9 }
 0x4f2   : > { %1169 = vmatmul.msk.bf16.vlgmr.msra.gmra.mxu1 %vm539_vm0, %v889_v10 }
 0x56f   : > { %v922_v16 = vpop.f32.mrf.mxu1 }
 0x570   : > { %v923_v17 = vadd.f32 %v1280_v15, %v922_v16 }
 0x572   : > { %v927_v18 = vmul.f32 0.044715, %v923_v17  ;;  %v926_v25 = vmul.f32 0.5, %v923_v17 }
 0x574   : > { %v928_v19 = vmul.f32 %v927_v18, %v923_v17 }
 0x576   : > { %v929_v20 = vmul.f32 %v928_v19, %v923_v17 }
 0x577   : > { %v924_v21 = vpop.f32.mrf.mxu1 }
 0x578   : > { %v930_v22 = vadd.f32 %v929_v20, %v923_v17 }
 0x57a   : > { %v931_v23 = vmul.f32 0.7978846, %v930_v22 }
 0x57c   : > { %1304 = vtanh.f32 %v931_v23 }
 0x582   : > { %v1305_v24 = vpop.eup %1304 }
 0x583   : > { %v933_v26 = vadd.f32 1.0, %v1305_v24 }
 0x585   : > { %v934_v27 = vmul.f32 %v933_v26, %v926_v25 }
 0x587   : > { %v935_v28 = vpack.c.bf16 %v934_v27, %v934_v27 }
 0x589   : > { %1186 = vmatmul.msk.bf16.vlgmr.msra.gmra.mxu3 %vm972_vm10, %v935_v28 }
 0x60c   : > { %v985_v30 = vpop.f32.mrf.mxu3 }
 0x60d   : > { %v986_v31 = vadd.f32 %v1281_v29, %v985_v30 }
 0x60f   : > { %v989_v32 = vadd.f32 %v986_v31, %v888_v9 }
 0x611   : > { %v992_v33 = vsel %vm539_vm0, %v989_v32, 0.0 }
 0x612   : > { %993 = vadd.xlane.f32.xlu0 %v992_v33 }
 0x614   : > { %v987_v34 = vpop.f32.mrf.mxu3 }
 0x685   : > { %v994_v35 = vpop.xlane.xlu0 %993 }
 0x686   : > { %v995_v36 = vmul.f32 %v994_v35, %v1704_v51 }
 0x688   : > { %v996_v37 = vsub.f32 %v989_v32, %v995_v36 }
 0x68a   : > { %v997_v38 = vmul.f32 %v996_v37, %v996_v37 }
 0x68c   : > { %v998_v39 = vsel %vm539_vm0, %v997_v38, 0.0 }
 0x68d   : > { %999 = vadd.xlane.f32.xlu0 %v998_v39 }
 0x700   : > { %v1000_v40 = vpop.xlane.xlu0 %999 }
 0x701   : > { %v1001_v41 = vmul.f32 %v1000_v40, %v1704_v51 }
 0x703   : > { %v1002_v42 = vadd.f32 1e-05, %v1001_v41 }
 0x705   : > { %1306 = vrsqrt.f32 %v1002_v42  ;;  %vm1009_vm12 = vweird.f32 %v1002_v42 }
 0x70b   : > { %v1307_v43 = vpop.eup %1306 }
 0x70c   : > { %v1004_v44 = vmul.f32 %v1307_v43, %v1002_v42  ;;  %vm1010_vm11 = vweird.f32 %v1307_v43 }
 0x70d   : > { %vm1011_vm13 = vmor %vm1009_vm12, %vm1010_vm11 }
 0x70e   : > { %v1005_v45 = vmul.f32 %v1307_v43, %v1004_v44 }
 0x710   : > { %v1006_v46 = vmul.f32 0.5, %v1005_v45 }
 0x712   : > { %v1007_v47 = vsub.f32 1.5, %v1006_v46 }
 0x714   : > { %v1008_v48 = vmul.f32 %v1307_v43, %v1007_v47 }
 0x716   : > { %v1012_v50 = vsel %vm1011_vm13, %v1307_v43, %v1008_v48 }
 0x717   : > { %v1013_v51 = vmul.f32 %v1012_v50, %v996_v37 }
 0x719   : > { %v1017_v53 = vmul.f32 %v1282_v49, %v1013_v51 }
 0x71b   : > { %v1021_v54 = vadd.f32 %v1283_v52, %v1017_v53 }
 0x71d   : > { %1022 = vst.msk [vmem:[%s510_s20] sm:$0xff] %vm539_vm0, %v1021_v54 }
 0x71e   : > { %1395 = shalt.err (!%p1392_p10)
}
 0x71f   : > { %1207 = dma.vmem_to_hbm [thread:$0]  (%p1593_p13), %s1037_s27, 128, %s1039_s22, %s1024_s28  }
 0x720 PF: > { %s1813_s23 = sld [smem:[#allocation12_spill]] }
 0x721   : > { %s1814_s15 = sld [smem:[#allocation14_spill]] }
 0x726   : > { %s1050_s16 = sand.u32 1, %s1813_s23  }
 0x727   : > { %p1815_p11 = scmp.ge.s32.totalorder %s1814_s15, 2  ;;  %s1051_s21 = scalar_lea.sflag [#allocation5], %s1050_s16 }
 0x729   : > { %p1218_p0 = pnand %p1815_p11, %p1598_p4 }
 0x72b   : > { %p1219_p2 = pneg %p1218_p0 }
 0x72d   : > { %1421 = dma.done.wait (%p1219_p2), %s1051_s21, 128  }
 0x72e   : > { %1423 = vsyncadd (%p1219_p2), %s1051_s21, 4294967168  ;;  %s1816_s16 = sld [smem:[#allocation15_spill]]  ;;  %s1819_s29 = smov %s1430_s30 }
 0x72f   : > { %s1817_s20 = sld [smem:[#allocation13_spill]] }
 0x730   : > { %s1818_s15 = sld [smem:[#allocation16_spill]] }
 0x734   : > { %p28_p6 = scmp.ge.s32.totalorder %s1816_s16, 4  }
 0x735   : > { %s1820_s30 = smov %s1817_s20 }
 0x736   :  { %30 = sbr.rel (!%p28_p6) target bundleno = 9 (0x9), region = 128 }
 0x73b   :  { %1057 = vsyncpa [#allocation4], 1 }
 0x73c   :  { %1059 = vsyncpa [#allocation4 + $0x1], 1 }
 0x73d   :  { %1060 = vsyncpa [#allocation7], 1 }
 0x73e   :  { %1061 = vsyncpa [#allocation5], 1 }
 0x73f   :  { %1063 = vsyncpa [#allocation5 + $0x1], 1 }

</bundles_post_ra>
